<compile_context>
chip_gen: v7x
topology: tpu7x:2x2x1
jax: 0.10.0
libtpu: 0.0.40
codegen_flags: <defaults>
</compile_context>

<pallas_src>
import numpy as np
import jax
import jax.numpy as jnp
from jax.experimental import pallas as pl
from jax.experimental.pallas import tpu as pltpu


# ----------------------------------------------------------------------------
# Model hyperparameters (consistent with the module defaults)
# ----------------------------------------------------------------------------
UNITS = 32
BACKCAST_LEN = 10
FORECAST_LEN = 5
TOTAL_LEN = BACKCAST_LEN + FORECAST_LEN
NUM_BLOCK_LAYERS = 4
THETAS_DIM = FORECAST_LEN    # nb_harmonics=None -> thetas_dim = forecast_length
BATCH = 8

SMALL_BATCH_MAX = 256        # <= this: single full-batch block, grid=(1,)
MAX_BATCH_TILE = 4096        # lane-dense tile cap for large batches (mult. of 128)


def linspace(backcast_length: int, forecast_length: int):
    lin_space = np.linspace(
        -backcast_length, forecast_length,
        backcast_length + forecast_length, dtype=np.float32,
    )
    return lin_space[:backcast_length], lin_space[backcast_length:]


def make_seasonal_basis(thetas_dim, backcast_length, forecast_length):
    b_ls, f_ls = linspace(backcast_length, forecast_length)
    if thetas_dim % 2 == 0:
        p1, p2 = thetas_dim // 2, thetas_dim // 2
    else:
        p1, p2 = thetas_dim // 2, thetas_dim // 2 + 1

    def basis(ls, n):
        s1 = (np.stack([np.cos(2 * np.pi * i * ls) for i in range(p1)])
              if p1 else np.zeros((0, n), np.float32))
        s2 = np.stack([np.sin(2 * np.pi * i * ls) for i in range(p2)])
        return np.concatenate([s1, s2], axis=0).astype(np.float32)

    return (jnp.asarray(basis(b_ls, backcast_length)),
            jnp.asarray(basis(f_ls, forecast_length)))


# ----------------------------------------------------------------------------
# Pallas kernel: entire forward hot path for one batch tile (batch on lanes)
# ----------------------------------------------------------------------------
def nbeats_seasonal_kernel(
    xT_ref,      # (BACKCAST_LEN, TB)         input, batch on lanes
    w0t_ref,     # (UNITS, BACKCAST_LEN)      first FC weight, transposed
    wht_ref,     # (3, UNITS, UNITS)          hidden FC weights, transposed, stacked
    bt_ref,      # (UNITS, 4)                 column l = bias of FC layer l
    woutT_ref,   # (TOTAL_LEN, UNITS)         = ([S_b|S_f]^T @ wtheta^T)
    outT_ref,    # (TOTAL_LEN, TB)            [backcast ; forecast], batch on lanes
):
    bt = bt_ref[...]                                         # (UNITS, 4)

    h = jnp.dot(w0t_ref[...], xT_ref[...], preferred_element_type=jnp.float32)
    h = jnp.maximum(h + bt[:, 0:1], 0.0)

    h = jnp.dot(wht_ref[0], h, preferred_element_type=jnp.float32)
    h = jnp.maximum(h + bt[:, 1:2], 0.0)

    h = jnp.dot(wht_ref[1], h, preferred_element_type=jnp.float32)
    h = jnp.maximum(h + bt[:, 2:3], 0.0)

    h = jnp.dot(wht_ref[2], h, preferred_element_type=jnp.float32)
    h = jnp.maximum(h + bt[:, 3:4], 0.0)

    # Fused (shared) theta projection + seasonal basis matmuls: one MXU push.
    outT_ref[...] = jnp.dot(woutT_ref[...], h, preferred_element_type=jnp.float32)


# ----------------------------------------------------------------------------
# Host-side packing: transpose weights, fold theta FC into the basis
# ----------------------------------------------------------------------------
def pack_params(params, s_backcast, s_forecast):
    (w0, b0), (w1, b1), (w2, b2), (w3, b3), wtheta = params
    w0t = w0.T                                                  # (U, BACKCAST)
    wht = jnp.stack([w1.T, w2.T, w3.T], axis=0)                 # (3, U, U)
    bt = jnp.stack(
        [b0.reshape(-1), b1.reshape(-1), b2.reshape(-1), b3.reshape(-1)],
        axis=1,
    )                                                           # (U, 4)
    s_fused = jnp.concatenate([s_backcast, s_forecast], axis=1)  # (theta, TOTAL)
    wout_t = jnp.dot(wtheta, s_fused).T                          # (TOTAL, U)
    return w0t, wht, bt, wout_t


# ----------------------------------------------------------------------------
# Jitted wrapper around pallas_call
# ----------------------------------------------------------------------------
def _round_up(x, m):
    return ((x + m - 1) // m) * m


def _batch_tile(B):
    if B <= SMALL_BATCH_MAX:
        return B  # single full block; dispatch-dominated regime
    # Lane-dense (multiple of 128) tiles, and at least 2 grid steps so the
    # "parallel" axis shards across v7x's two TensorCores.
    tb = min(MAX_BATCH_TILE, _round_up(-(-B // 2), 128))
    return min(tb, _round_up(B, 128))


@jax.jit
def nbeats_seasonal_forward(x, w0t, wht, bt, wout_t):
    B = x.shape[0]
    xT = x.T                      # (BACKCAST_LEN, B): batch on the lane dim
    TB = _batch_tile(B)
    grid = (pl.cdiv(B, TB),)

    outT = pl.pallas_call(
        nbeats_seasonal_kernel,
        out_shape=jax.ShapeDtypeStruct((TOTAL_LEN, B), jnp.float32),
        grid_spec=pltpu.PrefetchScalarGridSpec(
            num_scalar_prefetch=0,
            grid=grid,
            in_specs=[
                pl.BlockSpec((BACKCAST_LEN, TB), lambda i: (0, i)),
                pl.BlockSpec((UNITS, BACKCAST_LEN), lambda i: (0, 0)),
                pl.BlockSpec((NUM_BLOCK_LAYERS - 1, UNITS, UNITS),
                             lambda i: (0, 0, 0)),
                pl.BlockSpec((UNITS, NUM_BLOCK_LAYERS), lambda i: (0, 0)),
                pl.BlockSpec((TOTAL_LEN, UNITS), lambda i: (0, 0)),
            ],
            out_specs=pl.BlockSpec((TOTAL_LEN, TB), lambda i: (0, i)),
        ),
        compiler_params=pltpu.CompilerParams(
            dimension_semantics=("parallel",),
        ),
    )(xT, w0t, wht, bt, wout_t)

    # Slice + transpose back to the PyTorch (B, len) layout (cheap XLA ops).
    return outT[:BACKCAST_LEN, :].T, outT[BACKCAST_LEN:, :].T


# ----------------------------------------------------------------------------
# Deterministic parameter initialization (synthetic; shapes from __init__)
# ----------------------------------------------------------------------------
def init_params(key):
    ks = jax.random.split(key, 9)

    def lin(k, fan_in, fan_out):
        bound = 1.0 / np.sqrt(fan_in)
        return jax.random.uniform(k, (fan_in, fan_out), jnp.float32, -bound, bound)

    w0 = lin(ks[0], BACKCAST_LEN, UNITS)
    b0 = jax.random.uniform(ks[1], (1, UNITS), jnp.float32, -0.1, 0.1)
    w1 = lin(ks[2], UNITS, UNITS)
    b1 = jax.random.uniform(ks[3], (1, UNITS), jnp.float32, -0.1, 0.1)
    w2 = lin(ks[4], UNITS, UNITS)
    b2 = jax.random.uniform(ks[5], (1, UNITS), jnp.float32, -0.1, 0.1)
    w3 = lin(ks[6], UNITS, UNITS)
    b3 = jax.random.uniform(ks[7], (1, UNITS), jnp.float32, -0.1, 0.1)
    wtheta = lin(ks[8], UNITS, THETAS_DIM)   # shared theta_b_fc == theta_f_fc, bias=False
    return ((w0, b0), (w1, b1), (w2, b2), (w3, b3), wtheta)


def reference_forward(x, params, s_backcast, s_forecast):
    """Pure-JAX reference mirroring the PyTorch forward exactly (unfused)."""
    (w0, b0), (w1, b1), (w2, b2), (w3, b3), wtheta = params
    h = jnp.maximum(x @ w0 + b0, 0.0)
    h = jnp.maximum(h @ w1 + b1, 0.0)
    h = jnp.maximum(h @ w2 + b2, 0.0)
    h = jnp.maximum(h @ w3 + b3, 0.0)
    theta = h @ wtheta
    return theta @ s_backcast, theta @ s_forecast


if __name__ == "__main__":
    key = jax.random.PRNGKey(0)
    k_x, k_p, k_x2 = jax.random.split(key, 3)
    params = init_params(k_p)
    s_backcast, s_forecast = make_seasonal_basis(THETAS_DIM, BACKCAST_LEN, FORECAST_LEN)

    # Host-side packing / theta-basis folding (done once, outside the hot path).
    w0t, wht, bt, wout_t = pack_params(params, s_backcast, s_forecast)

    # --- Small-batch path: single full-batch block, grid=(1,) --------------
    x = jax.random.normal(k_x, (BATCH, BACKCAST_LEN), jnp.float32)
    backcast, forecast = nbeats_seasonal_forward(x, w0t, wht, bt, wout_t)
    backcast = jax.block_until_ready(backcast)
    forecast = jax.block_until_ready(forecast)

    ref_b, ref_f = reference_forward(x, params, s_backcast, s_forecast)
    # Folding wtheta @ S changes accumulation order -> ~1e-6 level differences.
    np.testing.assert_allclose(np.asarray(backcast), np.asarray(ref_b), rtol=1e-5, atol=1e-5)
    np.testing.assert_allclose(np.asarray(forecast), np.asarray(ref_f), rtol=1e-5, atol=1e-5)

    # --- Larger-batch path: lane-dense 128-multiple tiles, 2 parallel steps,
    #     batch not a multiple of the tile (exercises edge-block masking). ---
    x2 = jax.random.normal(k_x2, (384, BACKCAST_LEN), jnp.float32)
    b2, f2 = nbeats_seasonal_forward(x2, w0t, wht, bt, wout_t)
    b2 = jax.block_until_ready(b2)
    f2 = jax.block_until_ready(f2)

    ref_b2, ref_f2 = reference_forward(x2, params, s_backcast, s_forecast)
    np.testing.assert_allclose(np.asarray(b2), np.asarray(ref_b2), rtol=1e-5, atol=1e-5)
    np.testing.assert_allclose(np.asarray(f2), np.asarray(ref_f2), rtol=1e-5, atol=1e-5)

    print("KERNEL_OK")
</pallas_src>

<mosaic_0001>
module attributes {stable_mosaic.version = 11 : i64} {
  func.func @nbeats_seasonal_kernel(%arg0: i32, %arg1: memref<10x8xf32, #tpu.memory_space<vmem>>, %arg2: memref<32x10xf32, #tpu.memory_space<vmem>>, %arg3: memref<3x32x32xf32, #tpu.memory_space<vmem>>, %arg4: memref<32x4xf32, #tpu.memory_space<vmem>>, %arg5: memref<15x32xf32, #tpu.memory_space<vmem>>, %arg6: memref<15x8xf32, #tpu.memory_space<vmem>>) attributes {dimension_semantics = [#tpu.dimension_semantics<parallel>], iteration_bounds = array<i64: 1>, scalar_prefetch = 0 : i64, scratch_operands = 0 : i64, tpu.core_type = #tpu.core_type<tc>, window_params = [{transform_indices = @transform_0, window_bounds = array<i64: 10, 8>}, {pipeline_mode = #tpu.pipeline_mode<synchronous>, transform_indices = @transform_1, window_bounds = array<i64: 32, 10>}, {pipeline_mode = #tpu.pipeline_mode<synchronous>, transform_indices = @transform_2, window_bounds = array<i64: 3, 32, 32>}, {pipeline_mode = #tpu.pipeline_mode<synchronous>, transform_indices = @transform_3, window_bounds = array<i64: 32, 4>}, {pipeline_mode = #tpu.pipeline_mode<synchronous>, transform_indices = @transform_4, window_bounds = array<i64: 15, 32>}, {transform_indices = @transform_5, window_bounds = array<i64: 15, 8>}]} {
    %c0 = arith.constant 0 : index
    %c0_0 = arith.constant 0 : index
    %0 = vector.load %arg4[%c0, %c0_0] : memref<32x4xf32, #tpu.memory_space<vmem>>, vector<32x4xf32>
    %c0_1 = arith.constant 0 : index
    %c0_2 = arith.constant 0 : index
    %1 = vector.load %arg2[%c0_1, %c0_2] : memref<32x10xf32, #tpu.memory_space<vmem>>, vector<32x10xf32>
    %c0_3 = arith.constant 0 : index
    %c0_4 = arith.constant 0 : index
    %2 = vector.load %arg1[%c0_3, %c0_4] : memref<10x8xf32, #tpu.memory_space<vmem>>, vector<10x8xf32>
    %cst = arith.constant dense<0.000000e+00> : vector<32x8xf32>
    %3 = tpu.matmul %1, %2, %cst {dimension_numbers = #tpu.dot_dimension_numbers<[1], [0], [0], [1], [0, 0, 1, 1], [], []>} : vector<32x10xf32>, vector<10x8xf32>, vector<32x8xf32> -> vector<32x8xf32>
    %4 = vector.extract_strided_slice %0 {offsets = [0, 0], sizes = [32, 1], strides = [1, 1]} : vector<32x4xf32> to vector<32x1xf32>
    %5 = vector.broadcast %4 : vector<32x1xf32> to vector<32x8xf32>
    %6 = arith.addf %3, %5 : vector<32x8xf32>
    %cst_5 = arith.constant 0.000000e+00 : f32
    %7 = vector.broadcast %cst_5 : f32 to vector<32x8xf32>
    %8 = arith.maximumf %6, %7 : vector<32x8xf32>
    %c0_6 = arith.constant 0 : index
    %c0_7 = arith.constant 0 : index
    %c0_8 = arith.constant 0 : index
    %9 = vector.load %arg3[%c0_6, %c0_7, %c0_8] : memref<3x32x32xf32, #tpu.memory_space<vmem>>, vector<1x32x32xf32>
    %10 = vector.shape_cast %9 : vector<1x32x32xf32> to vector<32x32xf32>
    %cst_9 = arith.constant dense<0.000000e+00> : vector<32x8xf32>
    %11 = tpu.matmul %10, %8, %cst_9 {dimension_numbers = #tpu.dot_dimension_numbers<[1], [0], [0], [1], [0, 0, 1, 1], [], []>} : vector<32x32xf32>, vector<32x8xf32>, vector<32x8xf32> -> vector<32x8xf32>
    %12 = vector.extract_strided_slice %0 {offsets = [0, 1], sizes = [32, 1], strides = [1, 1]} : vector<32x4xf32> to vector<32x1xf32>
    %13 = vector.broadcast %12 : vector<32x1xf32> to vector<32x8xf32>
    %14 = arith.addf %11, %13 : vector<32x8xf32>
    %cst_10 = arith.constant 0.000000e+00 : f32
    %15 = vector.broadcast %cst_10 : f32 to vector<32x8xf32>
    %16 = arith.maximumf %14, %15 : vector<32x8xf32>
    %c1 = arith.constant 1 : index
    %c0_11 = arith.constant 0 : index
    %c0_12 = arith.constant 0 : index
    %17 = vector.load %arg3[%c1, %c0_11, %c0_12] : memref<3x32x32xf32, #tpu.memory_space<vmem>>, vector<1x32x32xf32>
    %18 = vector.shape_cast %17 : vector<1x32x32xf32> to vector<32x32xf32>
    %cst_13 = arith.constant dense<0.000000e+00> : vector<32x8xf32>
    %19 = tpu.matmul %18, %16, %cst_13 {dimension_numbers = #tpu.dot_dimension_numbers<[1], [0], [0], [1], [0, 0, 1, 1], [], []>} : vector<32x32xf32>, vector<32x8xf32>, vector<32x8xf32> -> vector<32x8xf32>
    %20 = vector.extract_strided_slice %0 {offsets = [0, 2], sizes = [32, 1], strides = [1, 1]} : vector<32x4xf32> to vector<32x1xf32>
    %21 = vector.broadcast %20 : vector<32x1xf32> to vector<32x8xf32>
    %22 = arith.addf %19, %21 : vector<32x8xf32>
    %cst_14 = arith.constant 0.000000e+00 : f32
    %23 = vector.broadcast %cst_14 : f32 to vector<32x8xf32>
    %24 = arith.maximumf %22, %23 : vector<32x8xf32>
    %c2 = arith.constant 2 : index
    %c0_15 = arith.constant 0 : index
    %c0_16 = arith.constant 0 : index
    %25 = vector.load %arg3[%c2, %c0_15, %c0_16] : memref<3x32x32xf32, #tpu.memory_space<vmem>>, vector<1x32x32xf32>
    %26 = vector.shape_cast %25 : vector<1x32x32xf32> to vector<32x32xf32>
    %cst_17 = arith.constant dense<0.000000e+00> : vector<32x8xf32>
    %27 = tpu.matmul %26, %24, %cst_17 {dimension_numbers = #tpu.dot_dimension_numbers<[1], [0], [0], [1], [0, 0, 1, 1], [], []>} : vector<32x32xf32>, vector<32x8xf32>, vector<32x8xf32> -> vector<32x8xf32>
    %28 = vector.extract_strided_slice %0 {offsets = [0, 3], sizes = [32, 1], strides = [1, 1]} : vector<32x4xf32> to vector<32x1xf32>
    %29 = vector.broadcast %28 : vector<32x1xf32> to vector<32x8xf32>
    %30 = arith.addf %27, %29 : vector<32x8xf32>
    %cst_18 = arith.constant 0.000000e+00 : f32
    %31 = vector.broadcast %cst_18 : f32 to vector<32x8xf32>
    %32 = arith.maximumf %30, %31 : vector<32x8xf32>
    %c0_19 = arith.constant 0 : index
    %c0_20 = arith.constant 0 : index
    %33 = vector.load %arg5[%c0_19, %c0_20] : memref<15x32xf32, #tpu.memory_space<vmem>>, vector<15x32xf32>
    %cst_21 = arith.constant dense<0.000000e+00> : vector<15x8xf32>
    %34 = tpu.matmul %33, %32, %cst_21 {dimension_numbers = #tpu.dot_dimension_numbers<[1], [0], [0], [1], [0, 0, 1, 1], [], []>} : vector<15x32xf32>, vector<32x8xf32>, vector<15x8xf32> -> vector<15x8xf32>
    %c0_22 = arith.constant 0 : index
    %c0_23 = arith.constant 0 : index
    %35 = vector.load %arg6[%c0_22, %c0_23] : memref<15x8xf32, #tpu.memory_space<vmem>>, vector<15x8xf32>
    tpu.vector_store %arg6[%c0_22, %c0_23], %34 {strides = array<i32>} : memref<15x8xf32, #tpu.memory_space<vmem>>, vector<15x8xf32>,
    return
  }
  func.func @transform_0(%arg0: i32) -> (i32, i32) {
    %c0_i32 = arith.constant 0 : i32
    %c0_i32_0 = arith.constant 0 : i32
    return %c0_i32, %arg0 : i32, i32
  }
  func.func @transform_1(%arg0: i32) -> (i32, i32) {
    %c0_i32 = arith.constant 0 : i32
    %c0_i32_0 = arith.constant 0 : i32
    %c0_i32_1 = arith.constant 0 : i32
    return %c0_i32, %c0_i32_0 : i32, i32
  }
  func.func @transform_2(%arg0: i32) -> (i32, i32, i32) {
    %c0_i32 = arith.constant 0 : i32
    %c0_i32_0 = arith.constant 0 : i32
    %c0_i32_1 = arith.constant 0 : i32
    %c0_i32_2 = arith.constant 0 : i32
    return %c0_i32, %c0_i32_0, %c0_i32_1 : i32, i32, i32
  }
  func.func @transform_3(%arg0: i32) -> (i32, i32) {
    %c0_i32 = arith.constant 0 : i32
    %c0_i32_0 = arith.constant 0 : i32
    %c0_i32_1 = arith.constant 0 : i32
    return %c0_i32, %c0_i32_0 : i32, i32
  }
  func.func @transform_4(%arg0: i32) -> (i32, i32) {
    %c0_i32 = arith.constant 0 : i32
    %c0_i32_0 = arith.constant 0 : i32
    %c0_i32_1 = arith.constant 0 : i32
    return %c0_i32, %c0_i32_0 : i32, i32
  }
  func.func @transform_5(%arg0: i32) -> (i32, i32) {
    %c0_i32 = arith.constant 0 : i32
    %c0_i32_0 = arith.constant 0 : i32
    return %c0_i32, %arg0 : i32, i32
  }
}

</mosaic_0001>

<bundles_post_ra>
// kernel: nbeats_seasonal_forward.1
= control target key start
LH: loop header
LB: loop body
LE: loop exit
PB: predicated region body
PF: predicated region fallthrough
CT: control target
= control target key end

     0   :  { %vm63_vm0 = vcmask 1041408   ;;  %vm50_vm1 = vcmask 80896   ;;  %vm790_vm2 = vmmov 1   ;;  %v791_v2 = vmov 0   ;;  %s945_s0 = inlined_call_operand.vmem [shape: f32[10,8], index: 0, kind: input, shape index: {}]   ;;  %s946_s1 = inlined_call_operand.vmem [shape: f32[32,10], index: 1, kind: input, shape index: {}]   ;;  %s947_s3 = inlined_call_operand.vmem [shape: f32[32,4], index: 3, kind: input, shape index: {}]   ;;  %s948_s2 = inlined_call_operand.vmem [shape: f32[3,32,32], index: 2, kind: input, shape index: {}]   ;;  %s949_s4 = inlined_call_operand.vmem [shape: f32[15,32], index: 4, kind: input, shape index: {}]   ;;  %s950_s5 = inlined_call_operand.vmem [shape: f32[15,8], index: 5, kind: output, shape index: {}]  }
   0x1   :  { %v28_v0 = vld [vmem:[%s945_s0] sm:$0xff]  ;;  %v29_v1 = vld [vmem:[%s945_s0 + $0x8] sm:$0x3]  ;;  %vm740_vm3 = vmpackc.low %vm63_vm0, %vm790_vm2  ;;  %782 = vset.pattern.permute.xlu0 %v791_v2  ;;  %783 = vset.pattern.permute.xlu1 %v791_v2  ;;  %vm176_vm4 = vcmask 261120   ;;  %v792_v13 = vmov 1   ;;  %v793_v36 = vmov 2  }
   0x2   :  { %v739_v3 = vpack.c.bf16 %v29_v1, %v28_v0  ;;  %v24_v4 = vld [vmem:[%s946_s1] sm:$0xff]  ;;  %v843_v6 = vld [vmem:[%s947_s3 + $0x10] sm:$0xff]  ;;  %v25_v7 = vld [vmem:[%s946_s1 + $0x8] sm:$0xff]  ;;  %v794_v59 = vmov 3   ;;  %vm607_vm5 = vcmask 63488   ;;  %vm605_vm6 = vcmask 64512  }
   0x3   :  { %680 = vmatprep.mubr.msk.f32.mxu0 %vm50_vm1, %v24_v4  ;;  %v838_v5 = vld [vmem:[%s947_s3] sm:$0xff]  ;;  %42 = vperm.xlu1 %783, %v843_v6   ;;  %v853_v8 = vld [vmem:[%s947_s3 + $0x8] sm:$0xff]  ;;  %v26_v9 = vld [vmem:[%s946_s1 + $0x10] sm:$0xff] }
   0x4   :  { %741 = vmatprep.subr.msk.bf16.mxu0 %vm740_vm3, %v739_v3  ;;  %32 = vperm.xlu0 %782, %v838_v5   ;;  %v861_v10 = vld [vmem:[%s947_s3 + $0x18] sm:$0xff]  ;;  %v156_v12 = vld [vmem:[%s948_s2] sm:$0xff]  ;;  %v157_v32 = vld [vmem:[%s948_s2 + $0x8] sm:$0xff] }
   0x5   :  { %744 = vmatpush3.bf16.msk.msra.mxu0 %vm740_vm3, %v739_v3  ;;  %v27_v11 = vld [vmem:[%s946_s1 + $0x18] sm:$0xff]  ;;  %694 = vmatprep.mubr.msk.f32.mxu1 %vm176_vm4, %v156_v12  ;;  %v158_v33 = vld [vmem:[%s948_s2 + $0x10] sm:$0xff]  ;;  %v622_v35 = vld [vmem:[%s948_s2 + $0x20] sm:$0xff] }
   0x6   :  { %v159_v34 = vld [vmem:[%s948_s2 + $0x18] sm:$0xff]  ;;  %v623_v55 = vld [vmem:[%s948_s2 + $0x28] sm:$0xff]  ;;  %v624_v56 = vld [vmem:[%s948_s2 + $0x30] sm:$0xff] }
   0x7   :  { %47 = vperm.xlu1 %783, %v861_v10   ;;  %v625_v57 = vld [vmem:[%s948_s2 + $0x38] sm:$0xff]  ;;  %v630_v58 = vld [vmem:[%s948_s2 + $0x40] sm:$0xff] }
   0x8   :  { %681 = vmatmul.mubr.msk.f32.vlgmr.msra.gmra.mrb[0].mxu0 %vm50_vm1, %v25_v7  ;;  %37 = vperm.xlu0 %782, %v853_v8  }
   0x9   :  { %683 = vmatprep.mubr.msk.f32.mxu0 %vm50_vm1, %v26_v9 }
   0xb   :  { %785 = vset.pattern.permute.xlu1 %v792_v13 }
   0xc   :  { %684 = vmatmul.mubr.msk.f32.gmra.mrb[2].mxu0 %vm50_vm1, %v27_v11  ;;  %784 = vset.pattern.permute.xlu0 %v792_v13 }
   0xd   :  { %165 = vperm.xlu1 %785, %v853_v8   ;;  %161 = vperm.xlu0 %784, %v838_v5  }
   0xe   :  { %708 = vmatprep.mubr.msk.f32.mxu0 %vm176_vm4, %v622_v35 }
  0x11   :  { %169 = vperm.xlu1 %785, %v843_v6   ;;  %173 = vperm.xlu0 %784, %v861_v10  }
  0x15   :  { %786 = vset.pattern.permute.xlu1 %v793_v36  ;;  %787 = vset.pattern.permute.xlu0 %v793_v36  ;;  %v523_v36 = vld [vmem:[%s949_s4 + $0x8] sm:$0x7f] }
  0x16   :  { %284 = vperm.xlu1 %786, %v838_v5   ;;  %288 = vperm.xlu0 %787, %v853_v8  }
  0x1a   :  { %292 = vperm.xlu1 %786, %v843_v6   ;;  %788 = vset.pattern.permute.xlu0 %v794_v59 }
  0x1b   :  { %406 = vperm.xlu0 %788, %v838_v5  }
  0x1e   :  { %296 = vperm.xlu1 %786, %v861_v10  }
  0x1f   :  { %418 = vperm.xlu0 %788, %v861_v10   ;;  %v631_v10 = vld [vmem:[%s948_s2 + $0x48] sm:$0xff] }
  0x22   :  { %789 = vset.pattern.permute.xlu1 %v794_v59 }
  0x23   :  { %410 = vperm.xlu1 %789, %v853_v8  }
  0x27   :  { %414 = vperm.xlu1 %789, %v843_v6  }
  0x82   :  { %v43_v15 = vpop.permute.xlu1 %42 }
  0x83   :  { %v33_v14 = vpop.permute.xlu0 %32 }
  0x86   :  { %v48_v22 = vpop.permute.xlu1 %47 }
  0x87   :  { %v38_v16 = vpop.permute.xlu0 %37 }
  0x8c   :  { %v162_v37 = vpop.permute.xlu0 %161  ;;  %v166_v38 = vpop.permute.xlu1 %165 }
  0x90   :  { %v174_v44 = vpop.permute.xlu0 %173  ;;  %v170_v47 = vpop.permute.xlu1 %169 }
  0x95   :  { %v285_v60 = vpop.permute.xlu1 %284  ;;  %v289_v62 = vpop.permute.xlu0 %288 }
  0x99   :  { %v293_v61 = vpop.permute.xlu1 %292 }
  0x9d   :  { %v297_v4 = vpop.permute.xlu1 %296 }
  0xdb   :  { %v682_v17 = vpop.f32.mrb[0].mxu0 }
  0xdc   :  { %v139_v18 = vadd.f32 %v682_v17, %v38_v16  ;;  %v133_v19 = vpop.f32.mrb[1].mxu0  ;;  %v633_v16 = vld [vmem:[%s948_s2 + $0x58] sm:$0xff]  ;;  %v522_v17 = vld [vmem:[%s949_s4] sm:$0xff] }
  0xdd   :  { %v134_v20 = vadd.f32 %v133_v19, %v33_v14  ;;  %v411_v19 = vpop.permute.xlu1 %410 }
  0xde   :  { %v153_v21 = vmax.f32 %v139_v18, 0.0  ;;  %v407_v18 = vpop.permute.xlu0 %406 }
  0xdf   :  { %v152_v23 = vmax.f32 %v134_v20, 0.0  ;;  %v685_v24 = vpop.f32.mrb[2].mxu0 }
  0xe0   :  { %v149_v25 = vadd.f32 %v685_v24, %v48_v22  ;;  %v143_v26 = vpop.f32.mrb[3].mxu0 }
  0xe1   :  { %v144_v27 = vadd.f32 %v143_v26, %v43_v15  ;;  %v745_v28 = vpack.c.bf16 %v153_v21, %v152_v23  ;;  %v632_v15 = vld [vmem:[%s948_s2 + $0x50] sm:$0xff] }
  0xe2   :  { %v155_v29 = vmax.f32 %v149_v25, 0.0  ;;  %v419_v25 = vpop.permute.xlu0 %418 }
  0xe3   :  { %v154_v30 = vmax.f32 %v144_v27, 0.0  ;;  %746 = vmatprep.subr.bf16.mxu1 %v745_v28 }
  0xe4   :  { %748 = vmatpush3.bf16.msra.mxu1 %v745_v28  ;;  %v415_v28 = vpop.permute.xlu1 %414 }
  0xe5   :  { %v749_v31 = vpack.c.bf16 %v155_v29, %v154_v30 }
  0xe7   :  { %750 = vmatprep.subr.bf16.mxu1 %v749_v31 }
  0xe8   :  { %752 = vmatpush3.bf16.msra.mxu1 %v749_v31 }
  0xeb   :  { %695 = vmatmul.mubr.msk.f32.vlgmr.msra.gmra.mrb[0].mxu1 %vm176_vm4, %v157_v32 }
  0xec   :  { %697 = vmatprep.mubr.msk.f32.mxu1 %vm176_vm4, %v158_v33 }
  0xef   :  { %698 = vmatmul.mubr.msk.f32.gmra.mrb[2].mxu1 %vm176_vm4, %v159_v34 }
  0xf0   :  { %722 = vmatprep.mubr.msk.f32.mxu1 %vm176_vm4, %v630_v58 }
 0x1be   :  { %v696_v39 = vpop.f32.mrb[0].mxu1 }
 0x1bf   :  { %v261_v40 = vadd.f32 %v696_v39, %v166_v38  ;;  %v255_v41 = vpop.f32.mrb[1].mxu1 }
 0x1c0   :  { %v256_v42 = vadd.f32 %v255_v41, %v162_v37 }
 0x1c1   :  { %v275_v43 = vmax.f32 %v261_v40, 0.0 }
 0x1c2   :  { %v274_v45 = vmax.f32 %v256_v42, 0.0  ;;  %v699_v46 = vpop.f32.mrb[2].mxu1 }
 0x1c3   :  { %v271_v48 = vadd.f32 %v699_v46, %v174_v44  ;;  %v265_v49 = vpop.f32.mrb[3].mxu1 }
 0x1c4   :  { %v753_v50 = vpack.c.bf16 %v275_v43, %v274_v45  ;;  %v266_v51 = vadd.f32 %v265_v49, %v170_v47 }
 0x1c5   :  { %v277_v52 = vmax.f32 %v271_v48, 0.0 }
 0x1c6   :  { %v276_v53 = vmax.f32 %v266_v51, 0.0  ;;  %754 = vmatprep.subr.bf16.mxu0 %v753_v50 }
 0x1c7   :  { %756 = vmatpush3.bf16.msra.mxu0 %v753_v50 }
 0x1c8   :  { %v757_v54 = vpack.c.bf16 %v277_v52, %v276_v53 }
 0x1ca   :  { %758 = vmatprep.subr.bf16.mxu0 %v757_v54 }
 0x1cb   :  { %760 = vmatpush3.bf16.msra.mxu0 %v757_v54 }
 0x1ce   :  { %709 = vmatmul.mubr.msk.f32.vlgmr.msra.gmra.mrb[4].mxu0 %vm176_vm4, %v623_v55 }
 0x1cf   :  { %711 = vmatprep.mubr.msk.f32.mxu0 %vm176_vm4, %v624_v56 }
 0x1d2   :  { %712 = vmatmul.mubr.msk.f32.gmra.mrb[6].mxu0 %vm176_vm4, %v625_v57 }
 0x1d3   :  { %736 = vmatprep.mubr.msk.f32.mxu0 %vm176_vm4, %v522_v17 }
 0x2a1   :  { %v710_v63 = vpop.f32.mrb[4].mxu0 }
 0x2a2   :  { %v383_v0 = vadd.f32 %v710_v63, %v289_v62  ;;  %v377_v1 = vpop.f32.mrb[5].mxu0 }
 0x2a3   :  { %v378_v2 = vadd.f32 %v377_v1, %v285_v60 }
 0x2a4   :  { %v397_v3 = vmax.f32 %v383_v0, 0.0 }
 0x2a5   :  { %v396_v7 = vmax.f32 %v378_v2, 0.0  ;;  %v713_v9 = vpop.f32.mrb[6].mxu0 }
 0x2a6   :  { %v393_v11 = vadd.f32 %v713_v9, %v297_v4  ;;  %v387_v12 = vpop.f32.mrb[7].mxu0 }
 0x2a7   :  { %v761_v8 = vpack.c.bf16 %v397_v3, %v396_v7  ;;  %v388_v13 = vadd.f32 %v387_v12, %v293_v61 }
 0x2a8   :  { %v399_v5 = vmax.f32 %v393_v11, 0.0 }
 0x2a9   :  { %v398_v14 = vmax.f32 %v388_v13, 0.0  ;;  %762 = vmatprep.subr.bf16.mxu1 %v761_v8 }
 0x2aa   :  { %764 = vmatpush3.bf16.msra.mxu1 %v761_v8 }
 0x2ab   :  { %v765_v6 = vpack.c.bf16 %v399_v5, %v398_v14 }
 0x2ad   :  { %766 = vmatprep.subr.bf16.mxu1 %v765_v6 }
 0x2ae   :  { %768 = vmatpush3.bf16.msra.mxu1 %v765_v6 }
 0x2b1   :  { %723 = vmatmul.mubr.msk.f32.vlgmr.msra.gmra.mrb[4].mxu1 %vm176_vm4, %v631_v10 }
 0x2b2   :  { %725 = vmatprep.mubr.msk.f32.mxu1 %vm176_vm4, %v632_v15 }
 0x2b5   :  { %726 = vmatmul.mubr.msk.f32.gmra.mrb[6].mxu1 %vm176_vm4, %v633_v16 }
 0x384   :  { %v724_v20 = vpop.f32.mrb[4].mxu1 }
 0x385   :  { %v505_v21 = vadd.f32 %v724_v20, %v411_v19  ;;  %v499_v22 = vpop.f32.mrb[5].mxu1 }
 0x386   :  { %v500_v23 = vadd.f32 %v499_v22, %v407_v18 }
 0x387   :  { %v519_v24 = vmax.f32 %v505_v21, 0.0 }
 0x388   :  { %v518_v26 = vmax.f32 %v500_v23, 0.0  ;;  %v727_v27 = vpop.f32.mrb[6].mxu1 }
 0x389   :  { %v515_v29 = vadd.f32 %v727_v27, %v419_v25  ;;  %v509_v30 = vpop.f32.mrb[7].mxu1 }
 0x38a   :  { %v769_v31 = vpack.c.bf16 %v519_v24, %v518_v26  ;;  %v510_v32 = vadd.f32 %v509_v30, %v415_v28 }
 0x38b   :  { %v521_v33 = vmax.f32 %v515_v29, 0.0 }
 0x38c   :  { %v520_v34 = vmax.f32 %v510_v32, 0.0  ;;  %770 = vmatprep.subr.bf16.mxu0 %v769_v31 }
 0x38d   :  { %772 = vmatpush3.bf16.msra.mxu0 %v769_v31 }
 0x38e   :  { %v773_v35 = vpack.c.bf16 %v521_v33, %v520_v34 }
 0x390   :  { %774 = vmatprep.subr.bf16.mxu0 %v773_v35 }
 0x391   :  { %776 = vmatpush3.bf16.msra.mxu0 %v773_v35 }
 0x394   :  { %737 = vmatmul.mubr.msk.f32.vlgmr.msra.gmra.mrb[8].mxu0 %vm176_vm4, %v523_v36 }
 0x467   :  { %v738_v37 = vpop.f32.mrb[8].mxu0 }
 0x468   :  { %608 = vst.msk [vmem:[%s950_s5 + $0x8] sm:$0x7f] %vm607_vm5, %v738_v37  ;;  %v596_v38 = vpop.f32.mrb[9].mxu0 }
 0x469   :  { %606 = vst.msk [vmem:[%s950_s5] sm:$0xff] %vm605_vm6, %v596_v38 }

</bundles_post_ra>
